<compile_context>
chip_gen: v7x
topology: tpu7x:2x2x1
jax: 0.10.0
libtpu: 0.0.40
codegen_flags: <defaults>
</compile_context>

<pallas_src>
import jax
import jax.numpy as jnp
from jax.experimental import pallas as pl
from jax.experimental.pallas import tpu as pltpu

BONDTYPE = ("single", "double", "triple", "aromatic")  # len == num_relations


def rgcn_kernel(counts_ref, y_ref, inv_deg_ref, root_ref, out_ref, acc_ref):
    """One (dest-row tile i, source tile k) step of the fused RGCN layer.

    counts_ref  : (R, TM, TK)   bf16  raw integer edge counts (un-normalized adjacency)
    y_ref       : (TK, R*Dout)  bf16  Y[:, r*Dout:(r+1)*Dout] = x @ W_r (source k-tile)
    inv_deg_ref : (R, TM, 1)    f32   exact 1/deg per relation for this dest-row tile
    root_ref    : (TM, Dout)    f32   x @ W_root + bias for this dest-row tile
    out_ref     : (TM, Dout)    f32
    acc_ref     : (TM, Dout)    f32   VMEM accumulator, persists across the k axis
    """
    k = pl.program_id(1)
    num_rel = counts_ref.shape[0]
    dout = out_ref.shape[-1]

    @pl.when(k == 0)
    def _():
        acc_ref[...] = root_ref[...]  # root (self) projection + bias

    # Per-relation neighbor aggregation for this source tile.  Each dot contracts over
    # the TK source nodes on the MXU (f32 accumulation); the per-destination 1/deg scale
    # is applied in f32 right after (exact mean -- no bf16 rounding of 1/deg, no
    # intermediate bf16 round-trip of the aggregates).
    upd = None
    for r in range(num_rel):
        part = jnp.dot(
            counts_ref[r],
            y_ref[:, r * dout:(r + 1) * dout],
            preferred_element_type=jnp.float32,
        )
        part = part * inv_deg_ref[r]
        upd = part if upd is None else upd + part
    acc_ref[...] += upd

    @pl.when(k == pl.num_programs(1) - 1)
    def _():
        # Tanh activation; Dropout is identity in eval mode.
        # TODO(synk): training-mode dropout (pltpu.prng_seed + pltpu.stateful_bernoulli).
        out_ref[...] = jnp.tanh(acc_ref[...]).astype(out_ref.dtype)


def _vmem_limit_bytes():
    """~75% of physical VMEM: ~96 MB on v5e/v6e (128 MiB), ~48 MB on v7x (64 MiB)."""
    cap = None
    try:
        info = pltpu.get_tpu_info()
        cap = getattr(info, "vmem_capacity_bytes", None) or getattr(info, "vmem_size_bytes", None)
    except Exception:
        cap = None
    if not cap:
        cap = 64 * 1024 * 1024  # conservative (v7x-sized) fallback
    return min(int(cap) * 3 // 4, 110 * 1024 * 1024)


def _pick_row_tile(n, target):
    """Largest multiple of 16 dividing n, <= target, leaving >= 2 row tiles when possible
    (keeps v7x's 2nd TensorCore busy). Falls back to the full axis."""
    cap = min(target, n // 2 if n >= 32 else n)
    cap = cap - cap % 16
    for cand in range(cap, 15, -16):
        if n % cand == 0:
            return cand
    return n


def _pick_src_tile(n, target):
    """Source (contraction) tile: a multiple of 128 dividing n, else the full axis."""
    if n % 128 != 0:
        return n
    cand = max(128, min(n, target - target % 128))
    while n % cand != 0:
        cand -= 128
    return cand


def rgcn_layer(x, edge_index, edge_type, w_rel, w_root, bias, num_relations,
               *, block_rows=256, block_src=512):
    """x: [N, Din] f32, edge_index: [2, E] i32 (row0=src j, row1=dst i), edge_type: [E] i32."""
    N, Din = x.shape
    Dout = w_root.shape[1]
    R = num_relations

    src, dst = edge_index[0], edge_index[1]

    # --- plain-JAX glue ---------------------------------------------------------------
    # Dense per-relation edge counts (small integers -> exact in bf16 up to 256).
    # NOT pre-normalized: mean normalization happens inside the kernel in f32.
    # TODO(synk): replace this O(R*N^2) dense scatter + adjacency stream with a CSR /
    # segment-sum formulation (PrefetchScalarGridSpec scalar prefetch of per-destination
    # edge offsets + neighbor ids) for graphs where E << N^2.
    counts = jnp.zeros((R, N, N), jnp.float32).at[edge_type, dst, src].add(1.0)
    counts_bf = counts.astype(jnp.bfloat16)

    # Exact f32 1/deg per (relation, destination) -- O(E) scatter, no N^2 divide pass.
    deg = jnp.zeros((R, N), jnp.float32).at[edge_type, dst].add(1.0)
    inv_deg = (1.0 / jnp.maximum(deg, 1.0)).reshape(R, N, 1)

    # Hoisted, lane-dense projections:
    #   Y[:, r*Dout:(r+1)*Dout] = x @ W_r   (bf16 operands, f32 MXU accumulate) -> (N, R*Dout)
    #   root = x @ W_root + bias            (f32)                               -> (N, Dout)
    x_bf = x.astype(jnp.bfloat16)
    w_stack = jnp.transpose(w_rel, (1, 0, 2)).reshape(Din, R * Dout).astype(jnp.bfloat16)
    y = jnp.dot(x_bf, w_stack, preferred_element_type=jnp.float32).astype(jnp.bfloat16)
    root = (x @ w_root + bias[None, :]).astype(jnp.float32)

    # --- tile / VMEM sizing -------------------------------------------------------------
    vmem_limit = _vmem_limit_bytes()
    tm = _pick_row_tile(N, block_rows)
    tk = _pick_src_tile(N, block_src)

    def _step_bytes(tm_, tk_):
        # Rough per-step VMEM footprint (counts & Y double-buffered by the pipeline).
        return (2 * R * tm_ * tk_ * 2            # counts tiles (bf16, x2 buffers)
                + 2 * tk_ * R * Dout * 2         # Y tiles (bf16, x2 buffers)
                + 2 * (R * tm_ + 2 * tm_ * Dout) * 4   # inv_deg + root + out (f32, x2)
                + tm_ * Dout * 4)                # f32 accumulator scratch

    budget = (vmem_limit * 3) // 5
    prev = None
    while _step_bytes(tm, tk) > budget and (tm, tk) != prev:
        prev = (tm, tk)
        if tk > 128 and N % 128 == 0:
            tk = _pick_src_tile(N, tk - 128)
        elif tm > 16:
            cand = _pick_row_tile(N, max(tm // 2, 16))
            tm = cand if cand < tm else tm

    assert N % tm == 0 and N % tk == 0
    grid = (N // tm, N // tk)

    out = pl.pallas_call(
        rgcn_kernel,
        out_shape=jax.ShapeDtypeStruct((N, Dout), jnp.float32),
        grid_spec=pltpu.PrefetchScalarGridSpec(
            num_scalar_prefetch=0,
            grid=grid,
            in_specs=[
                pl.BlockSpec((R, tm, tk), lambda i, k: (0, i, k)),     # edge counts
                pl.BlockSpec((tk, R * Dout), lambda i, k: (k, 0)),     # Y = x @ [W_0|..|W_{R-1}]
                pl.BlockSpec((R, tm, 1), lambda i, k: (0, i, 0)),      # exact f32 1/deg
                pl.BlockSpec((tm, Dout), lambda i, k: (i, 0)),         # x @ W_root + bias
            ],
            out_specs=pl.BlockSpec((tm, Dout), lambda i, k: (i, 0)),
            scratch_shapes=[pltpu.VMEM((tm, Dout), jnp.float32)],
        ),
        compiler_params=pltpu.CompilerParams(
            # Row tiles are independent -> v7x's 2nd TensorCore takes half the grid;
            # the source (K) axis is a reduction into the VMEM accumulator.
            dimension_semantics=("parallel", "arbitrary"),
            vmem_limit_bytes=vmem_limit,
        ),
    )(counts_bf, y, inv_deg, root)
    return out.astype(x.dtype)


def rgcn_reference_f32(x, edge_index, edge_type, w_rel, w_root, bias, num_relations):
    """Pure-f32 math reference (PyG RGCNConv mean aggregation + root + bias + tanh)."""
    N, _ = x.shape
    R = num_relations
    src, dst = edge_index[0], edge_index[1]
    counts = jnp.zeros((R, N, N), jnp.float32).at[edge_type, dst, src].add(1.0)
    deg = counts.sum(axis=-1, keepdims=True)
    adj = counts / jnp.maximum(deg, 1.0)
    out = x @ w_root + bias[None, :]
    for r in range(R):
        out = out + (adj[r] @ x) @ w_rel[r]
    return jnp.tanh(out)


def rgcn_reference_matched(x, edge_index, edge_type, w_rel, w_root, bias, num_relations):
    """Reference mirroring the kernel's quantization profile (bf16 x/W/Y, exact counts,
    f32 1/deg, f32 root projection)."""
    N, Din = x.shape
    Dout = w_root.shape[1]
    R = num_relations
    src, dst = edge_index[0], edge_index[1]
    counts = jnp.zeros((R, N, N), jnp.float32).at[edge_type, dst, src].add(1.0)
    counts = counts.astype(jnp.bfloat16).astype(jnp.float32)
    deg = jnp.zeros((R, N), jnp.float32).at[edge_type, dst].add(1.0)
    inv_deg = (1.0 / jnp.maximum(deg, 1.0))[:, :, None]
    xq = x.astype(jnp.bfloat16).astype(jnp.float32)
    w_stack = (jnp.transpose(w_rel, (1, 0, 2)).reshape(Din, R * Dout)
               .astype(jnp.bfloat16).astype(jnp.float32))
    y = (xq @ w_stack).astype(jnp.bfloat16).astype(jnp.float32)
    out = x @ w_root + bias[None, :]
    for r in range(R):
        out = out + (counts[r] @ y[:, r * Dout:(r + 1) * Dout]) * inv_deg[r]
    return jnp.tanh(out)


if __name__ == "__main__":
    key = jax.random.PRNGKey(0)
    N, E = 32, 64
    in_dim, out_dim = 32, 32
    R = len(BONDTYPE)

    k_x, k_ei, k_et, k_w, k_root, k_b = jax.random.split(key, 6)

    x = jax.random.normal(k_x, (N, in_dim), dtype=jnp.float32)
    edge_index = jax.random.randint(k_ei, (2, E), 0, N, dtype=jnp.int32)
    edge_type = jax.random.randint(k_et, (E,), 0, R, dtype=jnp.int32)

    # Deterministic Glorot-ish parameter init (shapes from RGCNConv(in_dim, out_dim, R)).
    w_rel = jax.random.normal(k_w, (R, in_dim, out_dim), dtype=jnp.float32) * (1.0 / jnp.sqrt(in_dim))
    w_root = jax.random.normal(k_root, (in_dim, out_dim), dtype=jnp.float32) * (1.0 / jnp.sqrt(in_dim))
    bias = jax.random.normal(k_b, (out_dim,), dtype=jnp.float32) * 0.01

    # N=32 -> tm=16 (2 parallel destination-row tiles), tk=32 (single source tile).
    out = rgcn_layer(x, edge_index, edge_type, w_rel, w_root, bias, R)
    out = jax.block_until_ready(out)
    assert out.shape == (N, out_dim)

    ref_q = rgcn_reference_matched(x, edge_index, edge_type, w_rel, w_root, bias, R)
    ref_f = rgcn_reference_f32(x, edge_index, edge_type, w_rel, w_root, bias, R)
    assert jnp.allclose(out, ref_q, atol=2e-2, rtol=2e-2), "mismatch vs quantization-matched reference"
    assert jnp.allclose(out, ref_f, atol=5e-2, rtol=5e-2), "mismatch vs f32 reference"

    print("KERNEL_OK")
</pallas_src>

<mosaic_0001>
module attributes {stable_mosaic.version = 11 : i64} {
  func.func @rgcn_kernel(%arg0: i32, %arg1: i32, %arg2: memref<4x16x32xbf16, #tpu.memory_space<vmem>>, %arg3: memref<32x128xbf16, #tpu.memory_space<vmem>>, %arg4: memref<4x16x1xf32, #tpu.memory_space<vmem>>, %arg5: memref<16x32xf32, #tpu.memory_space<vmem>>, %arg6: memref<16x32xf32, #tpu.memory_space<vmem>>, %arg7: memref<16x32xf32, #tpu.memory_space<vmem>>) attributes {dimension_semantics = [#tpu.dimension_semantics<parallel>, #tpu.dimension_semantics<arbitrary>], iteration_bounds = array<i64: 2, 1>, scalar_prefetch = 0 : i64, scratch_operands = 1 : i64, tpu.core_type = #tpu.core_type<tc>, window_params = [{transform_indices = @transform_0, window_bounds = array<i64: 4, 16, 32>}, {transform_indices = @transform_1, window_bounds = array<i64: 32, 128>}, {transform_indices = @transform_2, window_bounds = array<i64: 4, 16, 1>}, {transform_indices = @transform_3, window_bounds = array<i64: 16, 32>}, {transform_indices = @transform_4, window_bounds = array<i64: 16, 32>}]} {
    %c0_i32 = arith.constant 0 : i32
    %0 = arith.cmpi eq, %arg1, %c0_i32 : i32
    %1 = arith.extui %0 : i1 to i32
    %c0_i32_0 = arith.constant 0 : i32
    %2 = arith.cmpi ne, %1, %c0_i32_0 : i32
    scf.if %2 {
      %c0_35 = arith.constant 0 : index
      %c0_36 = arith.constant 0 : index
      %44 = vector.load %arg5[%c0_35, %c0_36] : memref<16x32xf32, #tpu.memory_space<vmem>>, vector<16x32xf32>
      %c0_37 = arith.constant 0 : index
      %c0_38 = arith.constant 0 : index
      %45 = vector.load %arg7[%c0_37, %c0_38] : memref<16x32xf32, #tpu.memory_space<vmem>>, vector<16x32xf32>
      tpu.vector_store %arg7[%c0_37, %c0_38], %44 {strides = array<i32>} : memref<16x32xf32, #tpu.memory_space<vmem>>, vector<16x32xf32>,
    } else {
    }
    %c0 = arith.constant 0 : index
    %c0_1 = arith.constant 0 : index
    %c0_2 = arith.constant 0 : index
    %3 = vector.load %arg2[%c0, %c0_1, %c0_2] : memref<4x16x32xbf16, #tpu.memory_space<vmem>>, vector<1x16x32xbf16>
    %4 = vector.shape_cast %3 : vector<1x16x32xbf16> to vector<16x32xbf16>
    %c0_3 = arith.constant 0 : index
    %c0_4 = arith.constant 0 : index
    %5 = vector.load %arg3[%c0_3, %c0_4] : memref<32x128xbf16, #tpu.memory_space<vmem>>, vector<32x32xbf16>
    %cst = arith.constant dense<0.000000e+00> : vector<16x32xf32>
    %6 = tpu.matmul %4, %5, %cst {dimension_numbers = #tpu.dot_dimension_numbers<[1], [0], [0], [1], [0, 0, 1, 1], [], []>} : vector<16x32xbf16>, vector<32x32xbf16>, vector<16x32xf32> -> vector<16x32xf32>
    %c0_5 = arith.constant 0 : index
    %c0_6 = arith.constant 0 : index
    %c0_7 = arith.constant 0 : index
    %7 = vector.load %arg4[%c0_5, %c0_6, %c0_7] : memref<4x16x1xf32, #tpu.memory_space<vmem>>, vector<1x16x1xf32>
    %8 = vector.shape_cast %7 : vector<1x16x1xf32> to vector<16x1xf32>
    %9 = vector.broadcast %8 : vector<16x1xf32> to vector<16x32xf32>
    %10 = arith.mulf %6, %9 : vector<16x32xf32>
    %c1 = arith.constant 1 : index
    %c0_8 = arith.constant 0 : index
    %c0_9 = arith.constant 0 : index
    %11 = vector.load %arg2[%c1, %c0_8, %c0_9] : memref<4x16x32xbf16, #tpu.memory_space<vmem>>, vector<1x16x32xbf16>
    %12 = vector.shape_cast %11 : vector<1x16x32xbf16> to vector<16x32xbf16>
    %c0_10 = arith.constant 0 : index
    %c32 = arith.constant 32 : index
    %13 = vector.load %arg3[%c0_10, %c32] : memref<32x128xbf16, #tpu.memory_space<vmem>>, vector<32x32xbf16>
    %cst_11 = arith.constant dense<0.000000e+00> : vector<16x32xf32>
    %14 = tpu.matmul %12, %13, %cst_11 {dimension_numbers = #tpu.dot_dimension_numbers<[1], [0], [0], [1], [0, 0, 1, 1], [], []>} : vector<16x32xbf16>, vector<32x32xbf16>, vector<16x32xf32> -> vector<16x32xf32>
    %c1_12 = arith.constant 1 : index
    %c0_13 = arith.constant 0 : index
    %c0_14 = arith.constant 0 : index
    %15 = vector.load %arg4[%c1_12, %c0_13, %c0_14] : memref<4x16x1xf32, #tpu.memory_space<vmem>>, vector<1x16x1xf32>
    %16 = vector.shape_cast %15 : vector<1x16x1xf32> to vector<16x1xf32>
    %17 = vector.broadcast %16 : vector<16x1xf32> to vector<16x32xf32>
    %18 = arith.mulf %14, %17 : vector<16x32xf32>
    %19 = arith.addf %10, %18 : vector<16x32xf32>
    %c2 = arith.constant 2 : index
    %c0_15 = arith.constant 0 : index
    %c0_16 = arith.constant 0 : index
    %20 = vector.load %arg2[%c2, %c0_15, %c0_16] : memref<4x16x32xbf16, #tpu.memory_space<vmem>>, vector<1x16x32xbf16>
    %21 = vector.shape_cast %20 : vector<1x16x32xbf16> to vector<16x32xbf16>
    %c0_17 = arith.constant 0 : index
    %c64 = arith.constant 64 : index
    %22 = vector.load %arg3[%c0_17, %c64] : memref<32x128xbf16, #tpu.memory_space<vmem>>, vector<32x32xbf16>
    %cst_18 = arith.constant dense<0.000000e+00> : vector<16x32xf32>
    %23 = tpu.matmul %21, %22, %cst_18 {dimension_numbers = #tpu.dot_dimension_numbers<[1], [0], [0], [1], [0, 0, 1, 1], [], []>} : vector<16x32xbf16>, vector<32x32xbf16>, vector<16x32xf32> -> vector<16x32xf32>
    %c2_19 = arith.constant 2 : index
    %c0_20 = arith.constant 0 : index
    %c0_21 = arith.constant 0 : index
    %24 = vector.load %arg4[%c2_19, %c0_20, %c0_21] : memref<4x16x1xf32, #tpu.memory_space<vmem>>, vector<1x16x1xf32>
    %25 = vector.shape_cast %24 : vector<1x16x1xf32> to vector<16x1xf32>
    %26 = vector.broadcast %25 : vector<16x1xf32> to vector<16x32xf32>
    %27 = arith.mulf %23, %26 : vector<16x32xf32>
    %28 = arith.addf %19, %27 : vector<16x32xf32>
    %c3 = arith.constant 3 : index
    %c0_22 = arith.constant 0 : index
    %c0_23 = arith.constant 0 : index
    %29 = vector.load %arg2[%c3, %c0_22, %c0_23] : memref<4x16x32xbf16, #tpu.memory_space<vmem>>, vector<1x16x32xbf16>
    %30 = vector.shape_cast %29 : vector<1x16x32xbf16> to vector<16x32xbf16>
    %c0_24 = arith.constant 0 : index
    %c96 = arith.constant 96 : index
    %31 = vector.load %arg3[%c0_24, %c96] : memref<32x128xbf16, #tpu.memory_space<vmem>>, vector<32x32xbf16>
    %cst_25 = arith.constant dense<0.000000e+00> : vector<16x32xf32>
    %32 = tpu.matmul %30, %31, %cst_25 {dimension_numbers = #tpu.dot_dimension_numbers<[1], [0], [0], [1], [0, 0, 1, 1], [], []>} : vector<16x32xbf16>, vector<32x32xbf16>, vector<16x32xf32> -> vector<16x32xf32>
    %c3_26 = arith.constant 3 : index
    %c0_27 = arith.constant 0 : index
    %c0_28 = arith.constant 0 : index
    %33 = vector.load %arg4[%c3_26, %c0_27, %c0_28] : memref<4x16x1xf32, #tpu.memory_space<vmem>>, vector<1x16x1xf32>
    %34 = vector.shape_cast %33 : vector<1x16x1xf32> to vector<16x1xf32>
    %35 = vector.broadcast %34 : vector<16x1xf32> to vector<16x32xf32>
    %36 = arith.mulf %32, %35 : vector<16x32xf32>
    %37 = arith.addf %28, %36 : vector<16x32xf32>
    %c0_29 = arith.constant 0 : index
    %c0_30 = arith.constant 0 : index
    %38 = vector.load %arg7[%c0_29, %c0_30] : memref<16x32xf32, #tpu.memory_space<vmem>>, vector<16x32xf32>
    %39 = arith.addf %38, %37 : vector<16x32xf32>
    %c0_31 = arith.constant 0 : index
    %c0_32 = arith.constant 0 : index
    %40 = vector.load %arg7[%c0_31, %c0_32] : memref<16x32xf32, #tpu.memory_space<vmem>>, vector<16x32xf32>
    tpu.vector_store %arg7[%c0_31, %c0_32], %39 {strides = array<i32>} : memref<16x32xf32, #tpu.memory_space<vmem>>, vector<16x32xf32>,
    %c0_i32_33 = arith.constant 0 : i32
    %41 = arith.cmpi eq, %arg1, %c0_i32_33 : i32
    %42 = arith.extui %41 : i1 to i32
    %c0_i32_34 = arith.constant 0 : i32
    %43 = arith.cmpi ne, %42, %c0_i32_34 : i32
    scf.if %43 {
      %c0_35 = arith.constant 0 : index
      %c0_36 = arith.constant 0 : index
      %44 = vector.load %arg7[%c0_35, %c0_36] : memref<16x32xf32, #tpu.memory_space<vmem>>, vector<16x32xf32>
      %45 = math.tanh %44 : vector<16x32xf32>
      %c0_37 = arith.constant 0 : index
      %c0_38 = arith.constant 0 : index
      %46 = vector.load %arg6[%c0_37, %c0_38] : memref<16x32xf32, #tpu.memory_space<vmem>>, vector<16x32xf32>
      tpu.vector_store %arg6[%c0_37, %c0_38], %45 {strides = array<i32>} : memref<16x32xf32, #tpu.memory_space<vmem>>, vector<16x32xf32>,
    } else {
    }
    return
  }
  func.func @transform_0(%arg0: i32, %arg1: i32) -> (i32, i32, i32) {
    %c0_i32 = arith.constant 0 : i32
    %c0_i32_0 = arith.constant 0 : i32
    return %c0_i32, %arg0, %arg1 : i32, i32, i32
  }
  func.func @transform_1(%arg0: i32, %arg1: i32) -> (i32, i32) {
    %c0_i32 = arith.constant 0 : i32
    %c0_i32_0 = arith.constant 0 : i32
    return %arg1, %c0_i32 : i32, i32
  }
  func.func @transform_2(%arg0: i32, %arg1: i32) -> (i32, i32, i32) {
    %c0_i32 = arith.constant 0 : i32
    %c0_i32_0 = arith.constant 0 : i32
    %c0_i32_1 = arith.constant 0 : i32
    return %c0_i32, %arg0, %c0_i32_0 : i32, i32, i32
  }
  func.func @transform_3(%arg0: i32, %arg1: i32) -> (i32, i32) {
    %c0_i32 = arith.constant 0 : i32
    %c0_i32_0 = arith.constant 0 : i32
    return %arg0, %c0_i32 : i32, i32
  }
  func.func @transform_4(%arg0: i32, %arg1: i32) -> (i32, i32) {
    %c0_i32 = arith.constant 0 : i32
    %c0_i32_0 = arith.constant 0 : i32
    return %arg0, %c0_i32 : i32, i32
  }
}

</mosaic_0001>

<bundles_post_ra>
// kernel: tpu_custom_call.1
= control target key start
LH: loop header
LB: loop body
LE: loop exit
PB: predicated region body
PF: predicated region fallthrough
CT: control target
= control target key end

     0   :  { %9 = vsyncpa [#allocation6], 0  ;;  %s1328_s0 = inlined_call_operand.vmem [shape: bf16[4,32,32], index: 0, kind: input, shape index: {}]   ;;  %s1329_s1 = inlined_call_operand.vmem [shape: bf16[32,128], index: 1, kind: input, shape index: {}]   ;;  %s1330_s2 = inlined_call_operand.vmem [shape: f32[4,32,1], index: 2, kind: input, shape index: {}]   ;;  %s1331_s3 = inlined_call_operand.vmem [shape: f32[32,32], index: 3, kind: input, shape index: {}]   ;;  %s1332_s4 = inlined_call_operand.hbm [shape: f32[32,32], index: 4, kind: output, shape index: {}]  }
   0x1   :  { %11 = vsyncpa [#allocation6 + $0x1], 0  ;;  %s1160_s15 = smov 0   ;;  %s1162_s16 = smov 0  }
   0x2   :  { %s1164_s17 = smov 0   ;;  %s1166_s18 = smov 0  }
   0x3   :  { %s1168_s19 = smov 0   ;;  %s1170_s20 = smov 0  }
   0x4 LB: > { %s880_s21 = sadd.s32 4294967295, %s1124_s20   ;;  %s881_s22 = sadd.s32 4294967294, %s1124_s20   ;;  %s1124_s20 = sphi %s1170_s20, %s17_s20   ;;  %s1120_s19 = sphi %s1168_s19, %s1340_s19   ;;  %s1116_s18 = sphi %s1166_s18, %s1339_s18   ;;  %s1112_s17 = sphi %s1164_s17, %s1338_s17   ;;  %s1108_s16 = sphi %s1162_s16, %s1337_s16   ;;  %s1104_s15 = sphi %s1160_s15, %s1336_s15  }
   0x5   : > { %s29_s23 = sadd.s32 1, %s1120_s19  ;;  %s38_s24 = sadd.s32 1, %s1112_s17 }
   0x6   : > { %p31_p0 = scmp.ge.s32.totalorder %s29_s23, 2  ;;  %p45_p1 = scmp.ne.s32.totalorder %s1112_s17, %s1108_s16 }
   0x7   : > { %p46_p2 = scmp.eq.s32.totalorder %s1124_s20, 0  ;;  %p153_p3 = scmp.eq.s32.totalorder %s880_s21, 1 }
   0x8   : > { %s1342_s23 = smov (%p31_p0, %s29_s23), 0  ;;  %p158_p6 = scmp.ne.s32.totalorder %s1108_s16, %s1104_s15 }
   0x9   : > { %p1199_p4 = por %p46_p2, %p45_p1  ;;  %p1203_p5 = por %p153_p3, %p45_p1 }
   0xa   : > { %s33_s27 = ssub.s32 %s1120_s19, %s1342_s23  ;;  %p159_p8 = scmp.eq.s32.totalorder %s881_s22, 1 }
   0xb   : > { %p36_p7 = scmp.eq.s32.totalorder %s33_s27, 0  ;;  %p884_p10 = scmp.ge.s32.totalorder %s1124_s20, 2 }
   0xc   : > { %p1214_p9 = por %p159_p8, %p158_p6 }
   0xd   : > { %s1212_s28 = scalar_select %p36_p7, %s1112_s17, %s38_s24  }
   0xe   : > { %184 = sbr.rel (%p884_p10) target bundleno = 36 (0x24), region = 20 }
  0x15   : > { %187 = sbr.rel (!%p1199_p4) target bundleno = 28 (0x1c), region = 24  ;;  %s189_s30 = sand.u32 (%p1199_p4), 1, %s1112_s17  }
  0x16   : > { %s924_s5 = sshll.u32 (%p1199_p4), %s1120_s19, 3  ;;  %s885_s6 = sshll.u32 (%p1199_p4), %s189_s30, 5 }
  0x17   : > { %s195_s9 = scalar_lea.vmem (%p1199_p4), %s1328_s0, %s924_s5  ;;  %s191_s10 = scalar_lea.vmem (%p1199_p4), [#allocation3], %s885_s6 }
  0x18   : > { %v211_v0 = vld [vmem:[%s195_s9] sm:$0xff] (%p1199_p4)   ;;  %v215_v1 = vld [vmem:[%s195_s9 + $0x10] sm:$0xff] (%p1199_p4)  }
  0x19   : > { %v219_v2 = vld [vmem:[%s195_s9 + $0x20] sm:$0xff] (%p1199_p4)   ;;  %212 = vst [vmem:[%s191_s10] sm:$0xff] (%p1199_p4), %v211_v0   ;;  %216 = vst [vmem:[%s191_s10 + $0x8] sm:$0xff] (%p1199_p4), %v215_v1   ;;  %v223_v3 = vld [vmem:[%s195_s9 + $0x30] sm:$0xff] (%p1199_p4)  }
  0x1a   : > { %220 = vst [vmem:[%s191_s10 + $0x10] sm:$0xff] (%p1199_p4), %v219_v2   ;;  %224 = vst [vmem:[%s191_s10 + $0x18] sm:$0xff] (%p1199_p4), %v223_v3  }
  0x1c PF: > { %265 = sbr.rel (!%p1199_p4) target bundleno = 36 (0x24), region = 65  ;;  %s267_s11 = sand.u32 (%p1199_p4), 1, %s1112_s17  }
  0x1d   : > { %s925_s12 = sshll.u32 (%p1199_p4), %s1120_s19, 4  ;;  %s888_s13 = sshll.u32 (%p1199_p4), %s267_s11, 6 }
  0x1e   : > { %s272_s22 = scalar_lea.vmem (%p1199_p4), %s1330_s2, %s925_s12  ;;  %s269_s24 = scalar_lea.vmem (%p1199_p4), [#allocation4], %s888_s13 }
  0x1f   : > { %v314_v4 = vld [vmem:[%s272_s22] sm:$0xff] (%p1199_p4)  ;;  %v316_v5 = vld [vmem:[%s272_s22 + $0x8] sm:$0xff] (%p1199_p4) }
  0x20   : > { %v318_v6 = vld [vmem:[%s272_s22 + $0x20] sm:$0xff] (%p1199_p4)  ;;  %315 = vst [vmem:[%s269_s24] sm:$0xff] (%p1199_p4), %v314_v4  ;;  %317 = vst [vmem:[%s269_s24 + $0x8] sm:$0xff] (%p1199_p4), %v316_v5  ;;  %v320_v7 = vld [vmem:[%s272_s22 + $0x28] sm:$0xff] (%p1199_p4) }
  0x21   : > { %319 = vst [vmem:[%s269_s24 + $0x10] sm:$0xff] (%p1199_p4), %v318_v6  ;;  %v322_v8 = vld [vmem:[%s272_s22 + $0x40] sm:$0xff] (%p1199_p4)  ;;  %v324_v9 = vld [vmem:[%s272_s22 + $0x48] sm:$0xff] (%p1199_p4)  ;;  %321 = vst [vmem:[%s269_s24 + $0x18] sm:$0xff] (%p1199_p4), %v320_v7 }
  0x22   : > { %323 = vst [vmem:[%s269_s24 + $0x20] sm:$0xff] (%p1199_p4), %v322_v8  ;;  %325 = vst [vmem:[%s269_s24 + $0x28] sm:$0xff] (%p1199_p4), %v324_v9  ;;  %v326_v10 = vld [vmem:[%s272_s22 + $0x60] sm:$0xff] (%p1199_p4)  ;;  %v328_v11 = vld [vmem:[%s272_s22 + $0x68] sm:$0xff] (%p1199_p4) }
  0x23   : > { %327 = vst [vmem:[%s269_s24 + $0x30] sm:$0xff] %v326_v10  ;;  %329 = vst [vmem:[%s269_s24 + $0x38] sm:$0xff] %v328_v11 }
  0x24 PF: > { %p891_p11 = scmp.ge.s32.totalorder %s1124_s20, 1  ;;  %p343_p12 = scmp.lt.s32.totalorder %s1124_s20, 3 }
  0x26   : > { %p344_p13 = pnand %p891_p11, %p343_p12 }
  0x27   : > { %v1036_v12 = vld [vmem:[%s1329_s1] sm:$0xff] (!%p344_p13)   ;;  %s1126_s30 = smov (!%p344_p13), 96   ;;  %s1127_s5 = smov (!%p344_p13), 64   ;;  %v1037_v13 = vld [vmem:[%s1329_s1 + $0x8] sm:$0xff] (!%p344_p13)   ;;  %v1128_v14 = vmov (!%p344_p13), 0.0   ;;  %vm1129_vm0 = vmmov (!%p344_p13), 0  }
  0x28   : > { %347 = sbr.rel (%p344_p13) target bundleno = 424 (0x1a8), region = 107  ;;  %511 = vrot.lane.b32.xlu0 (!%p344_p13), %v1036_v12, %s1126_s30  ;;  %586 = vrot.lane.b32.xlu1 (!%p344_p13), %v1036_v12, %s1127_s5  ;;  %s1244_s8 = sand.u32 (!%p344_p13), 1, %s1108_s16   ;;  %v1131_v16 = vmov (!%p344_p13), 0   ;;  %vm418_vm1 = vcmask (!%p344_p13), 261120  }
  0x29   : > { %939 = vmatprep.subr.bf16.mxu0 (!%p344_p13), %v1128_v14  ;;  %947 = vmatprep.subr.bf16.mxu1 (!%p344_p13), %v1128_v14  ;;  %s892_s9 = sshll.u32 (!%p344_p13), %s1244_s8, 5  ;;  %s893_s11 = sshll.u32 (!%p344_p13), %s1244_s8, 6 }
  0x2a   : > { %940 = vmatpush3.bf16.msra.mxu0 (!%p344_p13), %v1036_v12  ;;  %943 = vmatprep.mubr.msk.bf16.mxu0 (!%p344_p13), %vm1129_vm0, %v1128_v14  ;;  %s1248_s10 = scalar_lea.vmem (!%p344_p13), [#allocation3], %s892_s9  ;;  %s1130_s12 = smov (!%p344_p13), 32  }
  0x2b   : > { %941 = vmatprep.subr.bf16.mxu0 (!%p344_p13), %v1128_v14  ;;  %951 = vmatprep.mubr.msk.bf16.mxu1 (!%p344_p13), %vm1129_vm0, %v1128_v14  ;;  %v1038_v15 = vld [vmem:[%s1248_s10] sm:$0xff] (!%p344_p13)   ;;  %s359_s13 = scalar_lea.vmem (!%p344_p13), [#allocation4], %s893_s11  ;;  %v1039_v29 = vld [vmem:[%s1248_s10 + $0x8] sm:$0xff] (!%p344_p13)   ;;  %v1040_v31 = vld [vmem:[%s1248_s10 + $0x10] sm:$0xff] (!%p344_p13)   ;;  %s895_s14 = sshll.u32 (!%p344_p13), %s1116_s18, 1 }
  0x2c   : > { %513 = vrot.lane.b32.xlu0 (!%p344_p13), %v1037_v13, %s1126_s30  ;;  %661 = vrot.lane.b32.xlu1 (!%p344_p13), %v1036_v12, %s1130_s12  ;;  %v490_v17 = vld [vmem:[%s359_s13 + $0x8] sm:$0xff] (!%p344_p13)  ;;  %v489_v18 = vld [vmem:[%s359_s13] sm:$0xff] (!%p344_p13)  ;;  %p405_p0 = scmp.lt.s32.totalorder (!%p344_p13), %s895_s14, 3  ;;  %s894_s27 = sshll.u32 (!%p344_p13), %s1244_s8, 4 }
  0x2d   : > { %1035 = vset.pattern.permute.xlu1 (!%p344_p13), %v1131_v16  ;;  %1034 = vset.pattern.permute.xlu0 (!%p344_p13), %v1131_v16  ;;  %v905_v19 = vld [vmem:[%s359_s13 + $0x10] sm:$0xff] (!%p344_p13)  ;;  %v906_v20 = vld [vmem:[%s359_s13 + $0x18] sm:$0xff] (!%p344_p13)  ;;  %v911_v21 = vld [vmem:[%s359_s13 + $0x20] sm:$0xff] (!%p344_p13)  ;;  %s926_s30 = sshll.u32 (!%p344_p13), %s1116_s18, 8  ;;  %s744_s11 = scalar_lea.sflag (!%p344_p13), [#allocation6], %s1244_s8 }
  0x2e   : > { %942 = vmatpush3.bf16.msra.mxu0 (!%p344_p13), %v1037_v13  ;;  %v912_v22 = vld [vmem:[%s359_s13 + $0x28] sm:$0xff] (!%p344_p13)  ;;  %v917_v23 = vld [vmem:[%s359_s13 + $0x30] sm:$0xff] (!%p344_p13)  ;;  %v918_v24 = vld [vmem:[%s359_s13 + $0x38] sm:$0xff] (!%p344_p13) }
  0x2f   : > { %955 = vmatprep.subr.bf16.mxu0 %v1128_v14  ;;  %v1041_v33 = vld [vmem:[%s1248_s10 + $0x18] sm:$0xff]   ;;  %s1344_s14 = smov (!%p405_p0, %s895_s14), 3  ;;  %s1275_s10 = scalar_lea.hbm %s1332_s4, %s926_s30 }
  0x30   : > { %588 = vrot.lane.b32.xlu0 %v1037_v13, %s1127_s5  ;;  %663 = vrot.lane.b32.xlu1 %v1037_v13, %s1130_s12  ;;  %s896_s21 = sshll.u32 %s1344_s14, 3  ;;  %s395_s5 = scalar_lea.vmem [#allocation5], %s894_s27 }
  0x31   : > { %944 = vmatmul.mubr.msk.bf16.vlgmr.msra.gmra.mrb[0].mxu0 %vm418_vm1, %v1038_v15  ;;  %s408_s25 = scalar_lea.vmem %s1331_s3, %s896_s21  ;;  %s757_s6 = sshll.u32 %s395_s5, 4  ;;  %s1277_s6 = int_to_ptr.vmem [resolvable:$true] %s757_s6 }
  0x32   : > { %959 = vmatprep.mubr.msk.bf16.mxu0 %vm1129_vm0, %v1128_v14  ;;  %v416_v34 = vld [vmem:[%s408_s25] sm:$0xff]  ;;  %v417_v35 = vld [vmem:[%s408_s25 + $0x8] sm:$0xff]  ;;  %s1046_s18 = scalar_lea.vmem %s1277_s6, 256  ;;  %s1132_s12 = smov [#allocation5]  }
  0x33   : > { %419 = vst.msk [vmem:[#allocation2] sm:$0xff] %vm418_vm1, %v416_v34  ;;  %420 = vst.msk [vmem:[#allocation2 + $0x8] sm:$0xff] %vm418_vm1, %v417_v35  ;;  %p1047_p1 = scmp.ne.s32.totalorder %s1277_s6, %s1046_s18  ;;  %s1050_s13 = sshll.u32 %s1132_s12, 4  ;;  %s1051_s13 = int_to_ptr.vmem [resolvable:$false] %s1050_s13 }
  0x34   : > { %498 = vperm.xlu1 %1035, %v490_v17   ;;  %493 = vperm.xlu0 %1034, %v489_v18   ;;  %s1052_s14 = scalar_lea.vmem %s1051_s13, 512  ;;  %p1053_p4 = scmp.lt.s32.totalorder %s1277_s6, %s1051_s13 }
  0x35   : > { %p1048_p2 = pnand %p1047_p1, %p1203_p5  ;;  %p1054_p6 = scmp.lt.s32.totalorder %s1052_s14, %s1046_s18 }
  0x37   : > { %p1049_p3 = pneg %p1048_p2  ;;  %p1055_p7 = por %p1054_p6, %p1053_p4 }
  0x38   : > { %566 = vperm.xlu1 %1035, %v905_v19   ;;  %571 = vperm.xlu0 %1034, %v906_v20  }
  0x39   : > { %p1056_p8 = pnand %p1055_p7, %p1049_p3 }
  0x3a   : > { %v728_v5 = vld [vmem:[#allocation2] sm:$0xff]  ;;  %v729_v10 = vld [vmem:[#allocation2 + $0x8] sm:$0xff] }
  0x3c   : > { %641 = vperm.xlu1 %1035, %v911_v21   ;;  %646 = vperm.xlu0 %1034, %v912_v22  }
  0x40   : > { %716 = vperm.xlu1 %1035, %v917_v23   ;;  %721 = vperm.xlu0 %1034, %v918_v24  }
  0x9a   : > { %v512_v25 = vpop.permute.xlu0 %511  ;;  %v587_v26 = vpop.permute.xlu1 %586 }
  0x9b   : > { %948 = vmatpush3.bf16.msra.mxu1 %v512_v25  ;;  %956 = vmatpush3.bf16.msra.mxu0 %v587_v26 }
  0x9c   : > { %949 = vmatprep.subr.bf16.mxu1 %v1128_v14  ;;  %957 = vmatprep.subr.bf16.mxu0 %v1128_v14 }
  0x9e   : > { %v514_v27 = vpop.permute.xlu0 %513  ;;  %v662_v28 = vpop.permute.xlu1 %661 }
  0x9f   : > { %950 = vmatpush3.bf16.msra.mxu1 %v514_v27 }
  0xa0   : > { %963 = vmatprep.subr.bf16.mxu1 %v1128_v14 }
  0xa2   : > { %v589_v30 = vpop.permute.xlu0 %588  ;;  %952 = vmatmul.mubr.msk.bf16.vlgmr.msra.gmra.mrb[0].mxu1 %vm418_vm1, %v1039_v29  ;;  %v664_v32 = vpop.permute.xlu1 %663 }
  0xa3   : > { %958 = vmatpush3.bf16.msra.mxu0 %v589_v30  ;;  %964 = vmatpush3.bf16.msra.mxu1 %v662_v28 }
  0xa4   : > { %965 = vmatprep.subr.bf16.mxu1 %v1128_v14  ;;  %967 = vmatprep.mubr.msk.bf16.mxu1 %vm1129_vm0, %v1128_v14 }
  0xa6   : > { %960 = vmatmul.mubr.msk.bf16.vlgmr.msra.gmra.mrb[4].mxu0 %vm418_vm1, %v1040_v31 }
  0xa7   : > { %966 = vmatpush3.bf16.msra.mxu1 %v664_v32 }
  0xaa   : > { %968 = vmatmul.mubr.msk.bf16.vlgmr.msra.gmra.mrb[4].mxu1 %vm418_vm1, %v1041_v33 }
  0xb3   : > { %v499_v40 = vpop.permute.xlu1 %498  ;;  %v494_v41 = vpop.permute.xlu0 %493 }
  0xb7   : > { %v567_v42 = vpop.permute.xlu1 %566  ;;  %v572_v43 = vpop.permute.xlu0 %571 }
  0xbb   : > { %v642_v48 = vpop.permute.xlu1 %641  ;;  %v647_v54 = vpop.permute.xlu0 %646 }
  0xbf   : > { %v717_v63 = vpop.permute.xlu1 %716  ;;  %v722_v4 = vpop.permute.xlu0 %721 }
 0x104   : > { %v482_v36 = vpop.f32.mrb[0].mxu0 }
 0x105   : > { %v945_v37 = vpop.f32.mrb[1].mxu0  ;;  %v501_v45 = vmul.f32 %v494_v41, %v482_v36 }
 0x106   : > { %v485_v38 = vpop.f32.mrb[2].mxu0 }
 0x107   : > { %v946_v39 = vpop.f32.mrb[3].mxu0  ;;  %v502_v50 = vmul.f32 %v499_v40, %v485_v38 }
 0x175   : > { %v554_v44 = vpop.f32.mrb[0].mxu1 }
 0x176   : > { %v574_v46 = vmul.f32 %v567_v42, %v554_v44  ;;  %v953_v47 = vpop.f32.mrb[1].mxu1 }
 0x177   : > { %v557_v49 = vpop.f32.mrb[2].mxu1 }
 0x178   : > { %v576_v51 = vadd.f32 %v574_v46, %v501_v45  ;;  %v575_v52 = vmul.f32 %v572_v43, %v557_v49  ;;  %v954_v53 = vpop.f32.mrb[3].mxu1 }
 0x179   : > { %v629_v55 = vpop.f32.mrb[4].mxu0 }
 0x17a   : > { %v577_v56 = vadd.f32 %v575_v52, %v502_v50  ;;  %v649_v57 = vmul.f32 %v642_v48, %v629_v55  ;;  %v961_v58 = vpop.f32.mrb[5].mxu0 }
 0x17b   : > { %v632_v59 = vpop.f32.mrb[6].mxu0 }
 0x17c   : > { %v651_v60 = vadd.f32 %v649_v57, %v576_v51  ;;  %v650_v61 = vmul.f32 %v647_v54, %v632_v59  ;;  %v962_v62 = vpop.f32.mrb[7].mxu0 }
 0x17d   : > { %v704_v0 = vpop.f32.mrb[4].mxu1 }
 0x17e   : > { %v652_v1 = vadd.f32 %v650_v61, %v577_v56  ;;  %v724_v2 = vmul.f32 %v717_v63, %v704_v0  ;;  %v969_v3 = vpop.f32.mrb[5].mxu1 }
 0x17f   : > { %v707_v6 = vpop.f32.mrb[6].mxu1 }
 0x180   : > { %v726_v7 = vadd.f32 %v724_v2, %v651_v60  ;;  %v725_v8 = vmul.f32 %v722_v4, %v707_v6  ;;  %v970_v9 = vpop.f32.mrb[7].mxu1 }
 0x182   : > { %v730_v11 = vadd.f32 %v728_v5, %v726_v7  ;;  %v727_v12 = vadd.f32 %v725_v8, %v652_v1 }
 0x184   : > { %732 = vst.msk [vmem:[#allocation2] sm:$0xff] %vm418_vm1, %v730_v11  ;;  %v731_v13 = vadd.f32 %v729_v10, %v727_v12 }
 0x186   : > { %733 = vst.msk [vmem:[#allocation2 + $0x8] sm:$0xff] %vm418_vm1, %v731_v13 }
 0x18b   : > { %v737_v14 = vld [vmem:[#allocation2] sm:$0xff] }
 0x18c   : > { %1042 = vtanh.f32 %v737_v14 }
 0x18d   : > { %v738_v15 = vld [vmem:[#allocation2 + $0x8] sm:$0xff] }
 0x18e   : > { %1044 = vtanh.f32 %v738_v15 }
 0x196   : > { %v1043_v16 = vpop.eup %1042 }
 0x197   : > { %741 = vst.msk [vmem:[%s395_s5] sm:$0xff] %vm418_vm1, %v1043_v16 }
 0x198   : > { %v1045_v17 = vpop.eup %1044 }
 0x199   : > { %742 = vst.msk [vmem:[%s395_s5 + $0x8] sm:$0xff] %vm418_vm1, %v1045_v17 }
 0x19a   : > { %1059 = shalt.err (!%p1056_p8)
}
 0x19b   : > { %s1060_s21 = scalar_lea.hbm %s1275_s10, 256  ;;  %s1064_s25 = scalar_lea.hbm %s1332_s4, 512 }
 0x19c   : > { %p1061_p11 = scmp.ne.s32.totalorder %s1275_s10, %s1060_s21  ;;  %p1065_p0 = scmp.lt.u32.totalorder %s1275_s10, %s1332_s4 }
 0x19d   : > { %p1066_p1 = scmp.lt.u32.totalorder %s1064_s25, %s1060_s21  ;;  %p1068_p3 = scmp.lt.u32.totalorder %s1060_s21, %s1275_s10 }
 0x19e   : > { %p1062_p12 = pnand %p1061_p11, %p1203_p5 }
 0x19f   : > { %p1067_p2 = por %p1066_p1, %p1065_p0 }
 0x1a0   : > { %p1063_p13 = pneg %p1062_p12 }
 0x1a1   : > { %p1069_p4 = por %p1068_p3, %p1067_p2 }
 0x1a3   : > { %p1070_p6 = pnand %p1069_p4, %p1063_p13 }
 0x1a5   : > { %1073 = shalt.err (!%p1070_p6)
}
 0x1a6   : > { %s1133_s5 = smov 128   ;;  %s1134_s7 = smov 8  }
 0x1a7   : > { %971 = dma.vmem_to_hbm [thread:$0]  (%p1203_p5), %s1277_s6, 256, %s1275_s10, %s744_s11, %s1133_s5, %s1133_s5, %s1134_s7  }
 0x1a8 PF: > { %s772_s9 = sand.u32 1, %s1104_s15   ;;  %p974_p7 = pnand %p884_p10, %p1214_p9 }
 0x1a9   : > { %s773_s18 = scalar_lea.sflag [#allocation6], %s772_s9 }
 0x1aa   : > { %1099 = dma.done.wait (!%p974_p7), %s773_s18, 256  }
 0x1ab   : > { %1101 = vsyncadd (!%p974_p7), %s773_s18, 4294967040  ;;  %s17_s20 = sadd.s32 1, %s1124_s20   ;;  %s1336_s15 = smov %s1108_s16 }
 0x1ac   : > { %p14_p8 = scmp.ge.s32.totalorder %s17_s20, 4   ;;  %s1337_s16 = smov %s1112_s17 }
 0x1ad   : > { %s1338_s17 = smov %s1212_s28  ;;  %s1339_s18 = smov %s1120_s19 }
 0x1ae   : > { %s1340_s19 = smov %s1342_s23  ;;  %16 = sbr.rel (!%p14_p8) target bundleno = 4 (0x4), region = 183 }
 0x1b5   :  { %778 = vsyncpa [#allocation6], 1 }
 0x1b6   :  { %780 = vsyncpa [#allocation6 + $0x1], 1 }

</bundles_post_ra>
